<compile_context>
chip_gen: v7x
topology: tpu7x:2x2x1
jax: 0.10.0
libtpu: 0.0.40
codegen_flags: <defaults>
</compile_context>

<pallas_src>
import functools

import jax
import jax.numpy as jnp
from jax.experimental import pallas as pl
from jax.experimental.pallas import tpu as pltpu


_LANES = 128
_MAX_TILE_ROWS = 2048  # 2048 x 128 x 4B = 1 MiB of output per grid step.


def _uniform_from_bits(bits_u32):
    # Put the top 23 random bits into the mantissa of 1.0f -> [1, 2), minus 1.
    mantissa = bits_u32 >> 9
    fbits = mantissa | jnp.uint32(0x3F800000)
    return jax.lax.bitcast_convert_type(fbits, jnp.float32) - 1.0


def _dummy_meta_kernel(seed_ref, o_ref):
    tile_rows, lanes = o_ref.shape
    row0 = (pl.program_id(0) * tile_rows).astype(jnp.uint32)

    # Global element index of every output slot (counter for the hash PRNG).
    rows = jax.lax.broadcasted_iota(jnp.uint32, (tile_rows, lanes), 0)
    cols = jax.lax.broadcasted_iota(jnp.uint32, (tile_rows, lanes), 1)
    idx = (row0 + rows) * jnp.uint32(lanes) + cols

    seed = seed_ref[0, 0].astype(jnp.uint32)

    # Counter-based hash PRNG: seeded offset + murmur3 fmix32 rounds.
    # Pure VPU integer ops (shift / xor / mul / add) — no EUP, no MXU.
    x = idx ^ (seed * jnp.uint32(0x9E3779B9) + jnp.uint32(0x7F4A7C15))
    x = x ^ (x >> 16)
    x = x * jnp.uint32(0x85EBCA6B)
    x = x ^ (x >> 13)
    x = x * jnp.uint32(0xC2B2AE35)
    x = x ^ (x >> 16)
    # Fold the seed back in and mix once more.
    x = x + seed
    x = x ^ (x >> 13)
    x = x * jnp.uint32(0x27D4EB2F)
    x = x ^ (x >> 15)

    o_ref[...] = _uniform_from_bits(x)


def _round_up(x, m):
    return ((x + m - 1) // m) * m


@functools.partial(jax.jit, static_argnums=(0,))
def _dummy_meta_forward_impl(batch, seed_arr):
    rows_needed = pl.cdiv(max(batch, 1), _LANES)
    # Dense (8, 128)-aligned tiles; up to 1 MiB of output per grid step.
    tile_rows = min(_MAX_TILE_ROWS, _round_up(rows_needed, 8))
    rows_pad = _round_up(rows_needed, tile_rows)
    grid = (rows_pad // tile_rows,)

    out = pl.pallas_call(
        _dummy_meta_kernel,
        out_shape=jax.ShapeDtypeStruct((rows_pad, _LANES), jnp.float32),
        grid=grid,
        in_specs=[pl.BlockSpec((1, 1), lambda i: (0, 0))],
        out_specs=pl.BlockSpec((tile_rows, _LANES), lambda i: (i, 0)),
        compiler_params=pltpu.CompilerParams(
            dimension_semantics=("parallel",)),
    )(seed_arr)

    # Fused (under jit) slice / reshape back to the PyTorch (batch, 1) layout.
    return out.reshape(rows_pad * _LANES)[:batch][:, None]


def dummy_meta_model_forward(x, seed=0):
    """Pallas equivalent of DummyMetaModelNN.forward.

    Args:
      x: any array whose leading dim is the batch size (contents unused,
         matching the PyTorch module, so it is never copied to VMEM).
      seed: int seed controlling the "random" probabilities.

    Returns:
      (batch, 1) float32 uniform [0, 1) probabilities.
    """
    batch = int(x.shape[0])
    seed_arr = jnp.asarray([[seed]], dtype=jnp.int32)
    return _dummy_meta_forward_impl(batch, seed_arr)


if __name__ == "__main__":
    # Module config: DummyMetaModelNN(num_models=4, num_classes=11); forward
    # only uses x.size(0), but build a deterministic x at a consistent shape.
    num_models, num_classes = 4, 11
    batch = 8

    key = jax.random.PRNGKey(0)
    x = jax.random.normal(key, (batch, num_models * num_classes), jnp.float32)

    out = jax.block_until_ready(dummy_meta_model_forward(x, seed=0))

    # Semantics checks: shape (B, 1), uniform [0, 1), deterministic per seed.
    assert out.shape == (batch, 1), out.shape
    assert out.dtype == jnp.float32
    assert bool(jnp.all(jnp.isfinite(out)))
    assert bool(jnp.all((out >= 0.0) & (out < 1.0)))

    out2 = jax.block_until_ready(dummy_meta_model_forward(x, seed=0))
    assert jnp.array_equal(out, out2)

    out3 = jax.block_until_ready(dummy_meta_model_forward(x, seed=1))
    assert not jnp.array_equal(out, out3)  # different seed -> different draws

    print("KERNEL_OK")
</pallas_src>

<mosaic_0001>
module attributes {stable_mosaic.version = 11 : i64} {
  func.func @_dummy_meta_kernel(%arg0: i32, %arg1: memref<1x1xi32, #tpu.memory_space<vmem>>, %arg2: memref<8x128xf32, #tpu.memory_space<vmem>>) attributes {dimension_semantics = [#tpu.dimension_semantics<parallel>], iteration_bounds = array<i64: 1>, scalar_prefetch = 0 : i64, scratch_operands = 0 : i64, tpu.core_type = #tpu.core_type<tc>, window_params = [{pipeline_mode = #tpu.pipeline_mode<synchronous>, transform_indices = @transform_0, window_bounds = array<i64: 1, 1>}, {transform_indices = @transform_1, window_bounds = array<i64: 8, 128>}]} {
    %c8_i32 = arith.constant 8 : i32
    %0 = arith.muli %arg0, %c8_i32 : i32
    %1 = tpu.iota {dimensions = array<i32: 0>} : vector<8x128xi32>
    %2 = tpu.iota {dimensions = array<i32: 1>} : vector<8x128xi32>
    %3 = vector.broadcast %0 : i32 to vector<8x128xi32>
    %4 = arith.addi %3, %1 : vector<8x128xi32>
    %c128_i32 = arith.constant 128 : i32
    %5 = vector.broadcast %c128_i32 : i32 to vector<8x128xi32>
    %6 = arith.muli %4, %5 : vector<8x128xi32>
    %7 = arith.addi %6, %2 : vector<8x128xi32>
    %c0 = arith.constant 0 : index
    %c0_0 = arith.constant 0 : index
    %8 = vector.load %arg1[%c0, %c0_0] : memref<1x1xi32, #tpu.memory_space<vmem>>, vector<1x1xi32>
    %9 = vector.extract %8[0, 0] : i32 from vector<1x1xi32>
    %c-1640531527_i32 = arith.constant -1640531527 : i32
    %10 = arith.muli %9, %c-1640531527_i32 : i32
    %c2135587861_i32 = arith.constant 2135587861 : i32
    %11 = arith.addi %10, %c2135587861_i32 : i32
    %12 = vector.broadcast %11 : i32 to vector<8x128xi32>
    %13 = arith.xori %7, %12 : vector<8x128xi32>
    %c16_i32 = arith.constant 16 : i32
    %14 = vector.broadcast %c16_i32 : i32 to vector<8x128xi32>
    %15 = arith.shrui %13, %14 : vector<8x128xi32>
    %16 = arith.xori %13, %15 : vector<8x128xi32>
    %c-2048144789_i32 = arith.constant -2048144789 : i32
    %17 = vector.broadcast %c-2048144789_i32 : i32 to vector<8x128xi32>
    %18 = arith.muli %16, %17 : vector<8x128xi32>
    %c13_i32 = arith.constant 13 : i32
    %19 = vector.broadcast %c13_i32 : i32 to vector<8x128xi32>
    %20 = arith.shrui %18, %19 : vector<8x128xi32>
    %21 = arith.xori %18, %20 : vector<8x128xi32>
    %c-1028477387_i32 = arith.constant -1028477387 : i32
    %22 = vector.broadcast %c-1028477387_i32 : i32 to vector<8x128xi32>
    %23 = arith.muli %21, %22 : vector<8x128xi32>
    %c16_i32_1 = arith.constant 16 : i32
    %24 = vector.broadcast %c16_i32_1 : i32 to vector<8x128xi32>
    %25 = arith.shrui %23, %24 : vector<8x128xi32>
    %26 = arith.xori %23, %25 : vector<8x128xi32>
    %27 = vector.broadcast %9 : i32 to vector<8x128xi32>
    %28 = arith.addi %26, %27 : vector<8x128xi32>
    %c13_i32_2 = arith.constant 13 : i32
    %29 = vector.broadcast %c13_i32_2 : i32 to vector<8x128xi32>
    %30 = arith.shrui %28, %29 : vector<8x128xi32>
    %31 = arith.xori %28, %30 : vector<8x128xi32>
    %c668265263_i32 = arith.constant 668265263 : i32
    %32 = vector.broadcast %c668265263_i32 : i32 to vector<8x128xi32>
    %33 = arith.muli %31, %32 : vector<8x128xi32>
    %c15_i32 = arith.constant 15 : i32
    %34 = vector.broadcast %c15_i32 : i32 to vector<8x128xi32>
    %35 = arith.shrui %33, %34 : vector<8x128xi32>
    %36 = arith.xori %33, %35 : vector<8x128xi32>
    %c9_i32 = arith.constant 9 : i32
    %37 = vector.broadcast %c9_i32 : i32 to vector<8x128xi32>
    %38 = arith.shrui %36, %37 : vector<8x128xi32>
    %c1065353216_i32 = arith.constant 1065353216 : i32
    %39 = vector.broadcast %c1065353216_i32 : i32 to vector<8x128xi32>
    %40 = arith.ori %38, %39 : vector<8x128xi32>
    %41 = tpu.bitcast %40 : vector<8x128xi32> -> vector<8x128xf32>
    %cst = arith.constant 1.000000e+00 : f32
    %42 = vector.broadcast %cst : f32 to vector<8x128xf32>
    %43 = arith.subf %41, %42 : vector<8x128xf32>
    %c0_3 = arith.constant 0 : index
    %c0_4 = arith.constant 0 : index
    %44 = vector.load %arg2[%c0_3, %c0_4] : memref<8x128xf32, #tpu.memory_space<vmem>>, vector<8x128xf32>
    tpu.vector_store %arg2[%c0_3, %c0_4], %43 {strides = array<i32>} : memref<8x128xf32, #tpu.memory_space<vmem>>, vector<8x128xf32>,
    return
  }
  func.func @transform_0(%arg0: i32) -> (i32, i32) {
    %c0_i32 = arith.constant 0 : i32
    %c0_i32_0 = arith.constant 0 : i32
    %c0_i32_1 = arith.constant 0 : i32
    return %c0_i32, %c0_i32_0 : i32, i32
  }
  func.func @transform_1(%arg0: i32) -> (i32, i32) {
    %c0_i32 = arith.constant 0 : i32
    %c0_i32_0 = arith.constant 0 : i32
    return %arg0, %c0_i32 : i32, i32
  }
}

</mosaic_0001>

<bundles_post_ra>
// kernel: _dummy_meta_forward_impl.1
= control target key start
LH: loop header
LB: loop body
LE: loop exit
PB: predicated region body
PF: predicated region fallthrough
CT: control target
= control target key end

     0   :  { %v11_v2 = vlaneseq  ;;  %s68_s0 = inlined_call_operand.<no memory space> [shape: s32[1,1], index: 0, kind: input, shape index: {}]   ;;  %s69_s1 = inlined_call_operand.vmem [shape: f32[8,128], index: 1, kind: output, shape index: {}]  }
   0x1   :  { %v6_v0 = vstv %s68_s0 }
   0x2   :  { %7 = vst [vmem:[#allocation2] sm:$0x1] %v6_v0  ;;  %v12_v3 = vshrl.u32 %v11_v2, 7  ;;  %v14_v4 = vand.u32 127, %v11_v2 }
   0x4   :  { %v17_v5 = vmul.u32 128, %v12_v3 }
   0x6   :  { %v18_v6 = vadd.s32 %v17_v5, %v14_v4 }
   0x9   :  { %v19_v1 = vld [vmem:[#allocation2] sm:$0x1] }
   0xa   :  { %50 = vpush %v19_v1 }
  0x3b   :  { %s51_s8 = spop %50 }
  0x3c   :  { %s21_s9 = smul.u32 2654435769, %s51_s8  ;;  %v33_v17 = vstv %s51_s8 }
  0x3e   :  { %s22_s10 = sadd.s32 2135587861, %s21_s9 }
  0x3f   :  { %v23_v7 = vstv %s22_s10 }
  0x40   :  { %v24_v8 = vxor.u32 %v23_v7, %v18_v6 }
  0x42   :  { %v25_v9 = vshrl.u32 %v24_v8, 16 }
  0x44   :  { %v26_v10 = vxor.u32 %v25_v9, %v24_v8 }
  0x46   :  { %v27_v11 = vmul.u32 2246822507, %v26_v10 }
  0x48   :  { %v28_v12 = vshrl.u32 %v27_v11, 13 }
  0x4a   :  { %v29_v13 = vxor.u32 %v28_v12, %v27_v11 }
  0x4c   :  { %v30_v14 = vmul.u32 3266489909, %v29_v13 }
  0x4e   :  { %v31_v15 = vshrl.u32 %v30_v14, 16 }
  0x50   :  { %v32_v16 = vxor.u32 %v31_v15, %v30_v14 }
  0x52   :  { %v34_v18 = vadd.s32 %v33_v17, %v32_v16 }
  0x54   :  { %v35_v19 = vshrl.u32 %v34_v18, 13 }
  0x56   :  { %v36_v20 = vxor.u32 %v35_v19, %v34_v18 }
  0x58   :  { %v37_v21 = vmul.u32 668265263, %v36_v20 }
  0x5a   :  { %v38_v22 = vshrl.u32 %v37_v21, 15 }
  0x5c   :  { %v39_v23 = vxor.u32 %v38_v22, %v37_v21 }
  0x5e   :  { %v40_v24 = vshrl.u32 %v39_v23, 9 }
  0x60   :  { %v41_v25 = vor.u32 1065353216, %v40_v24 }
  0x62   :  { %v49_v26 = vadd.f32 -1.0, %v41_v25 }
  0x64   :  { %44 = vst [vmem:[%s69_s1] sm:$0xff] %v49_v26 }

</bundles_post_ra>
